<compile_context>
chip_gen: v7x
topology: tpu7x:2x2x1
jax: 0.10.0
libtpu: 0.0.40
codegen_flags: <defaults>
</compile_context>

<pallas_src>
import math
import numpy as np
import jax
import jax.numpy as jnp
from jax.experimental import pallas as pl
from jax.experimental.pallas import tpu as pltpu

N_HEADS = 4
D_MODEL = 32
NEG_INF = -100000000.0   # float32 masked_fill value used by the module


# --------------------------------- kernel ---------------------------------

def _rope_mha_fused_kernel(xin_ref, maskb_ref, wf_ref, bf_ref, cos_ref, sin_ref,
                           hsel_ref, wo_ref, bo_ref, o_ref):
    bb = maskb_ref.shape[0]            # batch elements handled by this grid step
    L = maskb_ref.shape[2]             # sequence length
    D = xin_ref.shape[1] // 3          # hidden dim
    n_heads = hsel_ref.shape[0] // L

    # One fused MXU push: block-diagonal weight computes
    # [q@Wq*s | q@(Wq R)*s | k@Wk | k@(Wk R) | v@Wv] for the whole (bb*L, 5D) slab.
    x = xin_ref[...]                                   # (bb*L, 3D) = [q | k | v]
    proj = jnp.dot(x, wf_ref[...], preferred_element_type=jnp.float32) + bf_ref[...]

    cos = cos_ref[...]                                 # (bb*L, D)
    sin = sin_ref[...]
    hsel = hsel_ref[...]                               # (n_heads*L, D) head-column selector

    # RoPE: the pairwise rotation is already folded into the weight columns; only the
    # cos/sin blend remains, applied to the whole batch block at once.
    qw = proj[:, 0:D] * cos + proj[:, D:2 * D] * sin   # already scaled by 1/sqrt(D)
    kw = proj[:, 2 * D:3 * D] * cos + proj[:, 3 * D:4 * D] * sin
    vp = proj[:, 4 * D:5 * D]

    wo = wo_ref[...]                                   # (D, out_pad), zero-padded lanes
    bo = bo_ref[...]                                   # (1, out_pad)

    for b in range(bb):                                # static unroll, bb is small
        rs = slice(b * L, (b + 1) * L)
        q_b, k_b, v_b = qw[rs], kw[rs], vp[rs]         # (L, D) each

        # Stack all heads along sublanes: ONE score matmul + ONE softmax for all heads.
        q_big = jnp.tile(q_b, (n_heads, 1)) * hsel     # (n_heads*L, D)
        s = jnp.dot(q_big, k_b.T, preferred_element_type=jnp.float32)   # (n_heads*L, L)
        s = s + maskb_ref[b]                           # additive key-mask bias (1, L)
        s = s - jnp.max(s, axis=-1, keepdims=True)
        p = jnp.exp(s)
        p = p * pl.reciprocal(jnp.sum(p, axis=-1, keepdims=True), approx=True)

        # Per-head context accumulated directly into the (L, D) layout (no concat).
        v_big = jnp.tile(v_b, (n_heads, 1)) * hsel     # (n_heads*L, D)
        ctx = jnp.zeros((L, D), jnp.float32)
        for h in range(n_heads):
            hr = slice(h * L, (h + 1) * L)
            ctx = ctx + jnp.dot(p[hr], v_big[hr], preferred_element_type=jnp.float32)

        y = jnp.dot(ctx, wo, preferred_element_type=jnp.float32) + bo   # (L, out_pad)
        o_ref[pl.ds(b * L, L), :] = y                  # lane-dense 128-wide store


# --------------------------- wrapper / constants ---------------------------

def make_rope_tables(L, n, d):
    """cos/sin tables matching sinusoidal_pos_embed + apply_RoPE's repeat_interleave,
    tiled across the n contiguous head column-blocks. Returns (L, d) float32."""
    hd = d // n
    inv_freq = 1.0 / (10000.0 ** (np.arange(0, hd, 2, dtype=np.float64) / hd))
    pos = np.arange(L, dtype=np.float64)
    sinusoid = np.einsum('i,j->ij', pos, inv_freq)                 # (L, hd/2)
    cos_h = np.repeat(np.cos(sinusoid), 2, axis=-1)                # [c0,c0,c1,c1,...]
    sin_h = np.repeat(np.sin(sinusoid), 2, axis=-1)
    cos_full = np.tile(cos_h, (1, n)).astype(np.float32)           # (L, d)
    sin_full = np.tile(sin_h, (1, n)).astype(np.float32)
    return jnp.asarray(cos_full), jnp.asarray(sin_full)


def make_rotation_matrix(d):
    """x2 = x @ R with x2[2i] = -x[2i+1], x2[2i+1] = x[2i] (interleaved RoPE rotation)."""
    R = np.zeros((d, d), dtype=np.float32)
    for j in range(0, d, 2):
        R[j + 1, j] = -1.0
        R[j, j + 1] = 1.0
    return jnp.asarray(R)


def make_head_select(L, n, d):
    """(n*L, d) selector: rows [h*L, (h+1)*L) are 1 on head h's column block, else 0."""
    hd = d // n
    sel = np.zeros((n * L, d), dtype=np.float32)
    for h in range(n):
        sel[h * L:(h + 1) * L, h * hd:(h + 1) * hd] = 1.0
    return jnp.asarray(sel)


def make_params(key, d):
    bound = 1.0 / math.sqrt(d)
    ks = jax.random.split(key, 8)
    params = []
    for i in range(4):  # q, k, v, out projections (x @ W + b convention)
        W = jax.random.uniform(ks[2 * i], (d, d), jnp.float32, -bound, bound)
        b = jax.random.uniform(ks[2 * i + 1], (1, d), jnp.float32, -bound, bound)
        params += [W, b]
    return tuple(params)


def rope_mha_forward(q, k, v, mask_bool, params, *, batch_block=None):
    """Forward pass of RotaryMultiDotProductionAttention (eval mode).

    batch_block: batch elements per grid step.  None -> fold the whole batch into one
    grid step (minimizes per-step pipeline overhead on single-TC v5e/v6e).  On 2-TC
    v7x, pass batch_block = B // 2 (or 1) so the 'parallel' grid axis shards across cores.
    """
    B, L, D = q.shape
    bb = B if batch_block is None else batch_block
    assert B % bb == 0, "batch_block must divide the batch size"
    n_steps = B // bb

    wq, bq, wk, bk, wv, bv, wo, bo = params
    scale = 1.0 / math.sqrt(D)                 # module divides scores by sqrt(hidden_dim)
    R = make_rotation_matrix(D)

    # --- wrapper-side algebra: fold rotation matrix + score scale into the weights ---
    wq_s, bq_s = wq * scale, bq * scale
    wqr_s, bqr_s = (wq @ R) * scale, (bq @ R) * scale
    wkr, bkr = wk @ R, bk @ R

    # --- fuse all projections into one block-diagonal matmul over [q|k|v] ---
    Z = jnp.zeros((D, D), jnp.float32)
    wf = jnp.concatenate([
        jnp.concatenate([wq_s, wqr_s, Z,  Z,   Z ], axis=1),
        jnp.concatenate([Z,    Z,     wk, wkr, Z ], axis=1),
        jnp.concatenate([Z,    Z,     Z,  Z,   wv], axis=1),
    ], axis=0)                                                     # (3D, 5D)
    bf = jnp.concatenate([bq_s, bqr_s, bk, bkr, bv], axis=1)       # (1, 5D)

    # --- zero-pad the output projection to a 128-lane multiple (lane-dense stores) ---
    out_pad = ((D + 127) // 128) * 128
    wo_p = jnp.concatenate([wo, jnp.zeros((D, out_pad - D), jnp.float32)], axis=1)
    bo_p = jnp.concatenate([bo, jnp.zeros((1, out_pad - D), jnp.float32)], axis=1)

    # --- constant tables ---
    cos_l, sin_l = make_rope_tables(L, N_HEADS, D)                 # (L, D)
    cos_t = jnp.tile(cos_l, (bb, 1))                               # (bb*L, D)
    sin_t = jnp.tile(sin_l, (bb, 1))
    hsel = make_head_select(L, N_HEADS, D)                         # (N*L, D)

    # --- additive key-mask bias (replaces in-kernel compare + select) ---
    mask_bias = jnp.where(mask_bool, NEG_INF, 0.0).astype(jnp.float32).reshape(B, 1, L)

    # --- [q|k|v] packed along features, batch folded into the row dim ---
    xin = jnp.concatenate([q, k, v], axis=-1).reshape(B * L, 3 * D)

    out = pl.pallas_call(
        _rope_mha_fused_kernel,
        out_shape=jax.ShapeDtypeStruct((B * L, out_pad), jnp.float32),
        grid=(n_steps,),
        in_specs=[
            pl.BlockSpec((bb * L, 3 * D), lambda i: (i, 0)),        # [q|k|v] slab
            pl.BlockSpec((bb, 1, L), lambda i: (i, 0, 0)),          # mask bias
            pl.BlockSpec((3 * D, 5 * D), lambda i: (0, 0)),         # fused weight
            pl.BlockSpec((1, 5 * D), lambda i: (0, 0)),             # fused bias
            pl.BlockSpec((bb * L, D), lambda i: (0, 0)),            # cos table
            pl.BlockSpec((bb * L, D), lambda i: (0, 0)),            # sin table
            pl.BlockSpec((N_HEADS * L, D), lambda i: (0, 0)),       # head selector
            pl.BlockSpec((D, out_pad), lambda i: (0, 0)),           # Wo (padded)
            pl.BlockSpec((1, out_pad), lambda i: (0, 0)),           # bo (padded)
        ],
        out_specs=pl.BlockSpec((bb * L, out_pad), lambda i: (i, 0)),
        compiler_params=pltpu.CompilerParams(dimension_semantics=("parallel",)),
    )(xin, mask_bias, wf, bf, cos_t, sin_t, hsel, wo_p, bo_p)

    return out[:, :D].reshape(B, L, D)


# ------------------------------- reference ---------------------------------

def reference_forward(q, k, v, mask_bool, params, L, n, d):
    """Pure-JAX reference written the PyTorch-faithful way (interleaved RoPE, masked_fill)."""
    hd = d // n
    wq, bq, wk, bk, wv, bv, wo, bo = params
    qp, kp, vp = q @ wq + bq, k @ wk + bk, v @ wv + bv
    B = q.shape[0]
    split = lambda x: x.reshape(B, L, n, hd).transpose(0, 2, 1, 3)   # (B, n, L, hd)
    qh, kh, vh = split(qp), split(kp), split(vp)

    inv_freq = 1.0 / (10000.0 ** (jnp.arange(0, hd, 2, dtype=jnp.float32) / hd))
    pos = jnp.arange(L, dtype=jnp.float32)
    sinusoid = jnp.einsum('i,j->ij', pos, inv_freq)
    cos_pos = jnp.repeat(jnp.cos(sinusoid), 2, axis=-1)[None, None]  # (1,1,L,hd)
    sin_pos = jnp.repeat(jnp.sin(sinusoid), 2, axis=-1)[None, None]

    def rope(x):
        x2 = jnp.stack([-x[..., 1::2], x[..., ::2]], axis=-1).reshape(x.shape)
        return x * cos_pos + x2 * sin_pos

    qh, kh = rope(qh), rope(kh)
    s = jnp.einsum('bnlh,bnph->bnlp', qh, kh) / math.sqrt(d)
    s = jnp.where(mask_bool[:, None, None, :], NEG_INF, s)
    p = jax.nn.softmax(s, axis=-1)
    ctx = jnp.einsum('bnlp,bnph->bnlh', p, vh).transpose(0, 2, 1, 3).reshape(B, L, d)
    return ctx @ wo + bo


if __name__ == "__main__":
    B, L, D, N = 2, 8, D_MODEL, N_HEADS

    key = jax.random.PRNGKey(0)
    kq, kk, kv, km, kp = jax.random.split(key, 5)
    q = jax.random.normal(kq, (B, L, D), jnp.float32)
    k = jax.random.normal(kk, (B, L, D), jnp.float32)
    v = jax.random.normal(kv, (B, L, D), jnp.float32)
    mask = jax.random.bernoulli(km, 0.3, (B, L))   # True == masked-out key position
    # keep at least one unmasked key per row so additive-bias masking == masked_fill
    mask = mask.at[:, 0].set(False)

    params = make_params(kp, D)
    ref = jax.block_until_ready(reference_forward(q, k, v, mask, params, L, N, D))

    # default: whole batch folded into one grid step (best on single-TC v5e / v6e)
    out = jax.block_until_ready(rope_mha_forward(q, k, v, mask, params))
    np.testing.assert_allclose(np.asarray(out), np.asarray(ref), rtol=2e-3, atol=2e-3)

    # batch sharded across parallel grid steps (use this variant on 2-TensorCore v7x)
    out2 = jax.block_until_ready(rope_mha_forward(q, k, v, mask, params, batch_block=1))
    np.testing.assert_allclose(np.asarray(out2), np.asarray(ref), rtol=2e-3, atol=2e-3)

    print("KERNEL_OK")
</pallas_src>

<mosaic_0001>
module attributes {stable_mosaic.version = 11 : i64} {
  func.func @_rope_mha_fused_kernel(%arg0: i32, %arg1: memref<16x96xf32, #tpu.memory_space<vmem>>, %arg2: memref<2x1x8xf32, #tpu.memory_space<vmem>>, %arg3: memref<96x160xf32, #tpu.memory_space<vmem>>, %arg4: memref<1x160xf32, #tpu.memory_space<vmem>>, %arg5: memref<16x32xf32, #tpu.memory_space<vmem>>, %arg6: memref<16x32xf32, #tpu.memory_space<vmem>>, %arg7: memref<32x32xf32, #tpu.memory_space<vmem>>, %arg8: memref<32x128xf32, #tpu.memory_space<vmem>>, %arg9: memref<1x128xf32, #tpu.memory_space<vmem>>, %arg10: memref<16x128xf32, #tpu.memory_space<vmem>>) attributes {dimension_semantics = [#tpu.dimension_semantics<parallel>], iteration_bounds = array<i64: 1>, scalar_prefetch = 0 : i64, scratch_operands = 0 : i64, tpu.core_type = #tpu.core_type<tc>, window_params = [{transform_indices = @transform_0, window_bounds = array<i64: 16, 96>}, {transform_indices = @transform_1, window_bounds = array<i64: 2, 1, 8>}, {pipeline_mode = #tpu.pipeline_mode<synchronous>, transform_indices = @transform_2, window_bounds = array<i64: 96, 160>}, {pipeline_mode = #tpu.pipeline_mode<synchronous>, transform_indices = @transform_3, window_bounds = array<i64: 1, 160>}, {pipeline_mode = #tpu.pipeline_mode<synchronous>, transform_indices = @transform_4, window_bounds = array<i64: 16, 32>}, {pipeline_mode = #tpu.pipeline_mode<synchronous>, transform_indices = @transform_5, window_bounds = array<i64: 16, 32>}, {pipeline_mode = #tpu.pipeline_mode<synchronous>, transform_indices = @transform_6, window_bounds = array<i64: 32, 32>}, {pipeline_mode = #tpu.pipeline_mode<synchronous>, transform_indices = @transform_7, window_bounds = array<i64: 32, 128>}, {pipeline_mode = #tpu.pipeline_mode<synchronous>, transform_indices = @transform_8, window_bounds = array<i64: 1, 128>}, {transform_indices = @transform_9, window_bounds = array<i64: 16, 128>}]} {
    %c0 = arith.constant 0 : index
    %c0_0 = arith.constant 0 : index
    %0 = vector.load %arg1[%c0, %c0_0] : memref<16x96xf32, #tpu.memory_space<vmem>>, vector<16x96xf32>
    %c0_1 = arith.constant 0 : index
    %c0_2 = arith.constant 0 : index
    %1 = vector.load %arg3[%c0_1, %c0_2] : memref<96x160xf32, #tpu.memory_space<vmem>>, vector<96x160xf32>
    %cst = arith.constant dense<0.000000e+00> : vector<16x160xf32>
    %2 = tpu.matmul %0, %1, %cst {dimension_numbers = #tpu.dot_dimension_numbers<[1], [0], [0], [1], [0, 0, 1, 1], [], []>} : vector<16x96xf32>, vector<96x160xf32>, vector<16x160xf32> -> vector<16x160xf32>
    %c0_3 = arith.constant 0 : index
    %c0_4 = arith.constant 0 : index
    %3 = vector.load %arg4[%c0_3, %c0_4] : memref<1x160xf32, #tpu.memory_space<vmem>>, vector<1x160xf32>
    %4 = vector.broadcast %3 : vector<1x160xf32> to vector<16x160xf32>
    %5 = arith.addf %2, %4 : vector<16x160xf32>
    %c0_5 = arith.constant 0 : index
    %c0_6 = arith.constant 0 : index
    %6 = vector.load %arg5[%c0_5, %c0_6] : memref<16x32xf32, #tpu.memory_space<vmem>>, vector<16x32xf32>
    %c0_7 = arith.constant 0 : index
    %c0_8 = arith.constant 0 : index
    %7 = vector.load %arg6[%c0_7, %c0_8] : memref<16x32xf32, #tpu.memory_space<vmem>>, vector<16x32xf32>
    %c0_9 = arith.constant 0 : index
    %c0_10 = arith.constant 0 : index
    %8 = vector.load %arg7[%c0_9, %c0_10] : memref<32x32xf32, #tpu.memory_space<vmem>>, vector<32x32xf32>
    %9 = vector.extract_strided_slice %5 {offsets = [0, 0], sizes = [16, 32], strides = [1, 1]} : vector<16x160xf32> to vector<16x32xf32>
    %10 = arith.mulf %9, %6 : vector<16x32xf32>
    %11 = vector.extract_strided_slice %5 {offsets = [0, 32], sizes = [16, 32], strides = [1, 1]} : vector<16x160xf32> to vector<16x32xf32>
    %12 = arith.mulf %11, %7 : vector<16x32xf32>
    %13 = arith.addf %10, %12 : vector<16x32xf32>
    %14 = vector.extract_strided_slice %5 {offsets = [0, 64], sizes = [16, 32], strides = [1, 1]} : vector<16x160xf32> to vector<16x32xf32>
    %15 = arith.mulf %14, %6 : vector<16x32xf32>
    %16 = vector.extract_strided_slice %5 {offsets = [0, 96], sizes = [16, 32], strides = [1, 1]} : vector<16x160xf32> to vector<16x32xf32>
    %17 = arith.mulf %16, %7 : vector<16x32xf32>
    %18 = arith.addf %15, %17 : vector<16x32xf32>
    %19 = vector.extract_strided_slice %5 {offsets = [0, 128], sizes = [16, 32], strides = [1, 1]} : vector<16x160xf32> to vector<16x32xf32>
    %c0_11 = arith.constant 0 : index
    %c0_12 = arith.constant 0 : index
    %20 = vector.load %arg8[%c0_11, %c0_12] : memref<32x128xf32, #tpu.memory_space<vmem>>, vector<32x128xf32>
    %c0_13 = arith.constant 0 : index
    %c0_14 = arith.constant 0 : index
    %21 = vector.load %arg9[%c0_13, %c0_14] : memref<1x128xf32, #tpu.memory_space<vmem>>, vector<1x128xf32>
    %22 = vector.extract_strided_slice %13 {offsets = [0, 0], sizes = [8, 32], strides = [1, 1]} : vector<16x32xf32> to vector<8x32xf32>
    %23 = vector.extract_strided_slice %18 {offsets = [0, 0], sizes = [8, 32], strides = [1, 1]} : vector<16x32xf32> to vector<8x32xf32>
    %24 = vector.extract_strided_slice %19 {offsets = [0, 0], sizes = [8, 32], strides = [1, 1]} : vector<16x32xf32> to vector<8x32xf32>
    %25 = tpu.concatenate %22, %22, %22, %22 in 0 : vector<8x32xf32>, vector<8x32xf32>, vector<8x32xf32>, vector<8x32xf32> -> vector<32x32xf32>
    %26 = arith.mulf %25, %8 : vector<32x32xf32>
    %27 = tpu.transpose %23, [1, 0] : vector<8x32xf32> -> vector<32x8xf32>
    %cst_15 = arith.constant dense<0.000000e+00> : vector<32x8xf32>
    %28 = tpu.matmul %26, %27, %cst_15 {dimension_numbers = #tpu.dot_dimension_numbers<[1], [0], [0], [1], [0, 0, 1, 1], [], []>} : vector<32x32xf32>, vector<32x8xf32>, vector<32x8xf32> -> vector<32x8xf32>
    %c0_16 = arith.constant 0 : index
    %c0_17 = arith.constant 0 : index
    %c0_18 = arith.constant 0 : index
    %29 = vector.load %arg2[%c0_16, %c0_17, %c0_18] : memref<2x1x8xf32, #tpu.memory_space<vmem>>, vector<1x1x8xf32>
    %30 = vector.shape_cast %29 : vector<1x1x8xf32> to vector<1x8xf32>
    %31 = vector.broadcast %30 : vector<1x8xf32> to vector<32x8xf32>
    %32 = arith.addf %28, %31 : vector<32x8xf32>
    %cst_19 = arith.constant dense<0xFF800000> : vector<32xf32>
    %33 = vector.multi_reduction <maximumf>, %32, %cst_19 [1] : vector<32x8xf32> to vector<32xf32>
    %34 = vector.shape_cast %33 : vector<32xf32> to vector<32x1xf32>
    %35 = vector.broadcast %34 : vector<32x1xf32> to vector<32x8xf32>
    %36 = arith.subf %32, %35 : vector<32x8xf32>
    %37 = math.exp %36 : vector<32x8xf32>
    %cst_20 = arith.constant dense<0.000000e+00> : vector<32xf32>
    %38 = vector.multi_reduction <add>, %37, %cst_20 [1] : vector<32x8xf32> to vector<32xf32>
    %39 = vector.shape_cast %38 : vector<32xf32> to vector<32x1xf32>
    %40 = tpu.reciprocal %39 {approx = true} : vector<32x1xf32> -> vector<32x1xf32>
    %41 = vector.broadcast %40 : vector<32x1xf32> to vector<32x8xf32>
    %42 = arith.mulf %37, %41 : vector<32x8xf32>
    %43 = tpu.concatenate %24, %24, %24, %24 in 0 : vector<8x32xf32>, vector<8x32xf32>, vector<8x32xf32>, vector<8x32xf32> -> vector<32x32xf32>
    %44 = arith.mulf %43, %8 : vector<32x32xf32>
    %cst_21 = arith.constant 0.000000e+00 : f32
    %45 = vector.broadcast %cst_21 : f32 to vector<8x32xf32>
    %46 = vector.extract_strided_slice %42 {offsets = [0, 0], sizes = [8, 8], strides = [1, 1]} : vector<32x8xf32> to vector<8x8xf32>
    %47 = vector.extract_strided_slice %44 {offsets = [0, 0], sizes = [8, 32], strides = [1, 1]} : vector<32x32xf32> to vector<8x32xf32>
    %cst_22 = arith.constant dense<0.000000e+00> : vector<8x32xf32>
    %48 = tpu.matmul %46, %47, %cst_22 {dimension_numbers = #tpu.dot_dimension_numbers<[1], [0], [0], [1], [0, 0, 1, 1], [], []>} : vector<8x8xf32>, vector<8x32xf32>, vector<8x32xf32> -> vector<8x32xf32>
    %49 = arith.addf %45, %48 : vector<8x32xf32>
    %50 = vector.extract_strided_slice %42 {offsets = [8, 0], sizes = [8, 8], strides = [1, 1]} : vector<32x8xf32> to vector<8x8xf32>
    %51 = vector.extract_strided_slice %44 {offsets = [8, 0], sizes = [8, 32], strides = [1, 1]} : vector<32x32xf32> to vector<8x32xf32>
    %cst_23 = arith.constant dense<0.000000e+00> : vector<8x32xf32>
    %52 = tpu.matmul %50, %51, %cst_23 {dimension_numbers = #tpu.dot_dimension_numbers<[1], [0], [0], [1], [0, 0, 1, 1], [], []>} : vector<8x8xf32>, vector<8x32xf32>, vector<8x32xf32> -> vector<8x32xf32>
    %53 = arith.addf %49, %52 : vector<8x32xf32>
    %54 = vector.extract_strided_slice %42 {offsets = [16, 0], sizes = [8, 8], strides = [1, 1]} : vector<32x8xf32> to vector<8x8xf32>
    %55 = vector.extract_strided_slice %44 {offsets = [16, 0], sizes = [8, 32], strides = [1, 1]} : vector<32x32xf32> to vector<8x32xf32>
    %cst_24 = arith.constant dense<0.000000e+00> : vector<8x32xf32>
    %56 = tpu.matmul %54, %55, %cst_24 {dimension_numbers = #tpu.dot_dimension_numbers<[1], [0], [0], [1], [0, 0, 1, 1], [], []>} : vector<8x8xf32>, vector<8x32xf32>, vector<8x32xf32> -> vector<8x32xf32>
    %57 = arith.addf %53, %56 : vector<8x32xf32>
    %58 = vector.extract_strided_slice %42 {offsets = [24, 0], sizes = [8, 8], strides = [1, 1]} : vector<32x8xf32> to vector<8x8xf32>
    %59 = vector.extract_strided_slice %44 {offsets = [24, 0], sizes = [8, 32], strides = [1, 1]} : vector<32x32xf32> to vector<8x32xf32>
    %cst_25 = arith.constant dense<0.000000e+00> : vector<8x32xf32>
    %60 = tpu.matmul %58, %59, %cst_25 {dimension_numbers = #tpu.dot_dimension_numbers<[1], [0], [0], [1], [0, 0, 1, 1], [], []>} : vector<8x8xf32>, vector<8x32xf32>, vector<8x32xf32> -> vector<8x32xf32>
    %61 = arith.addf %57, %60 : vector<8x32xf32>
    %cst_26 = arith.constant dense<0.000000e+00> : vector<8x128xf32>
    %62 = tpu.matmul %61, %20, %cst_26 {dimension_numbers = #tpu.dot_dimension_numbers<[1], [0], [0], [1], [0, 0, 1, 1], [], []>} : vector<8x32xf32>, vector<32x128xf32>, vector<8x128xf32> -> vector<8x128xf32>
    %63 = vector.broadcast %21 : vector<1x128xf32> to vector<8x128xf32>
    %64 = arith.addf %62, %63 : vector<8x128xf32>
    %c0_27 = arith.constant 0 : index
    %c0_28 = arith.constant 0 : index
    %65 = vector.load %arg10[%c0_27, %c0_28] : memref<16x128xf32, #tpu.memory_space<vmem>>, vector<8x128xf32>
    tpu.vector_store %arg10[%c0_27, %c0_28], %64 {strides = array<i32>} : memref<16x128xf32, #tpu.memory_space<vmem>>, vector<8x128xf32>,
    %66 = vector.extract_strided_slice %13 {offsets = [8, 0], sizes = [8, 32], strides = [1, 1]} : vector<16x32xf32> to vector<8x32xf32>
    %67 = vector.extract_strided_slice %18 {offsets = [8, 0], sizes = [8, 32], strides = [1, 1]} : vector<16x32xf32> to vector<8x32xf32>
    %68 = vector.extract_strided_slice %19 {offsets = [8, 0], sizes = [8, 32], strides = [1, 1]} : vector<16x32xf32> to vector<8x32xf32>
    %69 = tpu.concatenate %66, %66, %66, %66 in 0 : vector<8x32xf32>, vector<8x32xf32>, vector<8x32xf32>, vector<8x32xf32> -> vector<32x32xf32>
    %70 = arith.mulf %69, %8 : vector<32x32xf32>
    %71 = tpu.transpose %67, [1, 0] : vector<8x32xf32> -> vector<32x8xf32>
    %cst_29 = arith.constant dense<0.000000e+00> : vector<32x8xf32>
    %72 = tpu.matmul %70, %71, %cst_29 {dimension_numbers = #tpu.dot_dimension_numbers<[1], [0], [0], [1], [0, 0, 1, 1], [], []>} : vector<32x32xf32>, vector<32x8xf32>, vector<32x8xf32> -> vector<32x8xf32>
    %c1 = arith.constant 1 : index
    %c0_30 = arith.constant 0 : index
    %c0_31 = arith.constant 0 : index
    %73 = vector.load %arg2[%c1, %c0_30, %c0_31] : memref<2x1x8xf32, #tpu.memory_space<vmem>>, vector<1x1x8xf32>
    %74 = vector.shape_cast %73 : vector<1x1x8xf32> to vector<1x8xf32>
    %75 = vector.broadcast %74 : vector<1x8xf32> to vector<32x8xf32>
    %76 = arith.addf %72, %75 : vector<32x8xf32>
    %cst_32 = arith.constant dense<0xFF800000> : vector<32xf32>
    %77 = vector.multi_reduction <maximumf>, %76, %cst_32 [1] : vector<32x8xf32> to vector<32xf32>
    %78 = vector.shape_cast %77 : vector<32xf32> to vector<32x1xf32>
    %79 = vector.broadcast %78 : vector<32x1xf32> to vector<32x8xf32>
    %80 = arith.subf %76, %79 : vector<32x8xf32>
    %81 = math.exp %80 : vector<32x8xf32>
    %cst_33 = arith.constant dense<0.000000e+00> : vector<32xf32>
    %82 = vector.multi_reduction <add>, %81, %cst_33 [1] : vector<32x8xf32> to vector<32xf32>
    %83 = vector.shape_cast %82 : vector<32xf32> to vector<32x1xf32>
    %84 = tpu.reciprocal %83 {approx = true} : vector<32x1xf32> -> vector<32x1xf32>
    %85 = vector.broadcast %84 : vector<32x1xf32> to vector<32x8xf32>
    %86 = arith.mulf %81, %85 : vector<32x8xf32>
    %87 = tpu.concatenate %68, %68, %68, %68 in 0 : vector<8x32xf32>, vector<8x32xf32>, vector<8x32xf32>, vector<8x32xf32> -> vector<32x32xf32>
    %88 = arith.mulf %87, %8 : vector<32x32xf32>
    %cst_34 = arith.constant 0.000000e+00 : f32
    %89 = vector.broadcast %cst_34 : f32 to vector<8x32xf32>
    %90 = vector.extract_strided_slice %86 {offsets = [0, 0], sizes = [8, 8], strides = [1, 1]} : vector<32x8xf32> to vector<8x8xf32>
    %91 = vector.extract_strided_slice %88 {offsets = [0, 0], sizes = [8, 32], strides = [1, 1]} : vector<32x32xf32> to vector<8x32xf32>
    %cst_35 = arith.constant dense<0.000000e+00> : vector<8x32xf32>
    %92 = tpu.matmul %90, %91, %cst_35 {dimension_numbers = #tpu.dot_dimension_numbers<[1], [0], [0], [1], [0, 0, 1, 1], [], []>} : vector<8x8xf32>, vector<8x32xf32>, vector<8x32xf32> -> vector<8x32xf32>
    %93 = arith.addf %89, %92 : vector<8x32xf32>
    %94 = vector.extract_strided_slice %86 {offsets = [8, 0], sizes = [8, 8], strides = [1, 1]} : vector<32x8xf32> to vector<8x8xf32>
    %95 = vector.extract_strided_slice %88 {offsets = [8, 0], sizes = [8, 32], strides = [1, 1]} : vector<32x32xf32> to vector<8x32xf32>
    %cst_36 = arith.constant dense<0.000000e+00> : vector<8x32xf32>
    %96 = tpu.matmul %94, %95, %cst_36 {dimension_numbers = #tpu.dot_dimension_numbers<[1], [0], [0], [1], [0, 0, 1, 1], [], []>} : vector<8x8xf32>, vector<8x32xf32>, vector<8x32xf32> -> vector<8x32xf32>
    %97 = arith.addf %93, %96 : vector<8x32xf32>
    %98 = vector.extract_strided_slice %86 {offsets = [16, 0], sizes = [8, 8], strides = [1, 1]} : vector<32x8xf32> to vector<8x8xf32>
    %99 = vector.extract_strided_slice %88 {offsets = [16, 0], sizes = [8, 32], strides = [1, 1]} : vector<32x32xf32> to vector<8x32xf32>
    %cst_37 = arith.constant dense<0.000000e+00> : vector<8x32xf32>
    %100 = tpu.matmul %98, %99, %cst_37 {dimension_numbers = #tpu.dot_dimension_numbers<[1], [0], [0], [1], [0, 0, 1, 1], [], []>} : vector<8x8xf32>, vector<8x32xf32>, vector<8x32xf32> -> vector<8x32xf32>
    %101 = arith.addf %97, %100 : vector<8x32xf32>
    %102 = vector.extract_strided_slice %86 {offsets = [24, 0], sizes = [8, 8], strides = [1, 1]} : vector<32x8xf32> to vector<8x8xf32>
    %103 = vector.extract_strided_slice %88 {offsets = [24, 0], sizes = [8, 32], strides = [1, 1]} : vector<32x32xf32> to vector<8x32xf32>
    %cst_38 = arith.constant dense<0.000000e+00> : vector<8x32xf32>
    %104 = tpu.matmul %102, %103, %cst_38 {dimension_numbers = #tpu.dot_dimension_numbers<[1], [0], [0], [1], [0, 0, 1, 1], [], []>} : vector<8x8xf32>, vector<8x32xf32>, vector<8x32xf32> -> vector<8x32xf32>
    %105 = arith.addf %101, %104 : vector<8x32xf32>
    %cst_39 = arith.constant dense<0.000000e+00> : vector<8x128xf32>
    %106 = tpu.matmul %105, %20, %cst_39 {dimension_numbers = #tpu.dot_dimension_numbers<[1], [0], [0], [1], [0, 0, 1, 1], [], []>} : vector<8x32xf32>, vector<32x128xf32>, vector<8x128xf32> -> vector<8x128xf32>
    %107 = vector.broadcast %21 : vector<1x128xf32> to vector<8x128xf32>
    %108 = arith.addf %106, %107 : vector<8x128xf32>
    %c8 = arith.constant 8 : index
    %c0_40 = arith.constant 0 : index
    %109 = vector.load %arg10[%c8, %c0_40] : memref<16x128xf32, #tpu.memory_space<vmem>>, vector<8x128xf32>
    tpu.vector_store %arg10[%c8, %c0_40], %108 {strides = array<i32>} : memref<16x128xf32, #tpu.memory_space<vmem>>, vector<8x128xf32>,
    return
  }
  func.func @transform_0(%arg0: i32) -> (i32, i32) {
    %c0_i32 = arith.constant 0 : i32
    %c0_i32_0 = arith.constant 0 : i32
    return %arg0, %c0_i32 : i32, i32
  }
  func.func @transform_1(%arg0: i32) -> (i32, i32, i32) {
    %c0_i32 = arith.constant 0 : i32
    %c0_i32_0 = arith.constant 0 : i32
    %c0_i32_1 = arith.constant 0 : i32
    return %arg0, %c0_i32, %c0_i32_0 : i32, i32, i32
  }
  func.func @transform_2(%arg0: i32) -> (i32, i32) {
    %c0_i32 = arith.constant 0 : i32
    %c0_i32_0 = arith.constant 0 : i32
    %c0_i32_1 = arith.constant 0 : i32
    return %c0_i32, %c0_i32_0 : i32, i32
  }
  func.func @transform_3(%arg0: i32) -> (i32, i32) {
    %c0_i32 = arith.constant 0 : i32
    %c0_i32_0 = arith.constant 0 : i32
    %c0_i32_1 = arith.constant 0 : i32
    return %c0_i32, %c0_i32_0 : i32, i32
  }
  func.func @transform_4(%arg0: i32) -> (i32, i32) {
    %c0_i32 = arith.constant 0 : i32
    %c0_i32_0 = arith.constant 0 : i32
    %c0_i32_1 = arith.constant 0 : i32
    return %c0_i32, %c0_i32_0 : i32, i32
  }
  func.func @transform_5(%arg0: i32) -> (i32, i32) {
    %c0_i32 = arith.constant 0 : i32
    %c0_i32_0 = arith.constant 0 : i32
    %c0_i32_1 = arith.constant 0 : i32
    return %c0_i32, %c0_i32_0 : i32, i32
  }
  func.func @transform_6(%arg0: i32) -> (i32, i32) {
    %c0_i32 = arith.constant 0 : i32
    %c0_i32_0 = arith.constant 0 : i32
    %c0_i32_1 = arith.constant 0 : i32
    return %c0_i32, %c0_i32_0 : i32, i32
  }
  func.func @transform_7(%arg0: i32) -> (i32, i32) {
    %c0_i32 = arith.constant 0 : i32
    %c0_i32_0 = arith.constant 0 : i32
    %c0_i32_1 = arith.constant 0 : i32
    return %c0_i32, %c0_i32_0 : i32, i32
  }
  func.func @transform_8(%arg0: i32) -> (i32, i32) {
    %c0_i32 = arith.constant 0 : i32
    %c0_i32_0 = arith.constant 0 : i32
    %c0_i32_1 = arith.constant 0 : i32
    return %c0_i32, %c0_i32_0 : i32, i32
  }
  func.func @transform_9(%arg0: i32) -> (i32, i32) {
    %c0_i32 = arith.constant 0 : i32
    %c0_i32_0 = arith.constant 0 : i32
    return %arg0, %c0_i32 : i32, i32
  }
}

</mosaic_0001>

<bundles_post_ra>
// kernel: tpu_custom_call.1
= control target key start
LH: loop header
LB: loop body
LE: loop exit
PB: predicated region body
PF: predicated region fallthrough
CT: control target
= control target key end

     0   :  { %v1554_v7 = vmov 0.0   ;;  %s1555_s22 = smov 96   ;;  %s1881_s0 = inlined_call_operand.vmem [shape: f32[16,96], index: 0, kind: input, shape index: {}]   ;;  %s1882_s1 = inlined_call_operand.vmem [shape: f32[2,1,8], index: 1, kind: input, shape index: {}]   ;;  %s1883_s2 = inlined_call_operand.vmem [shape: f32[96,160], index: 2, kind: input, shape index: {}]   ;;  %s1884_s3 = inlined_call_operand.vmem [shape: f32[1,160], index: 3, kind: input, shape index: {}]   ;;  %s1885_s4 = inlined_call_operand.vmem [shape: f32[16,32], index: 4, kind: input, shape index: {}]   ;;  %s1886_s5 = inlined_call_operand.vmem [shape: f32[16,32], index: 5, kind: input, shape index: {}]   ;;  %s1887_s6 = inlined_call_operand.vmem [shape: f32[32,32], index: 6, kind: input, shape index: {}]   ;;  %s1888_s7 = inlined_call_operand.vmem [shape: f32[32,128], index: 7, kind: input, shape index: {}]   ;;  %s1889_s8 = inlined_call_operand.vmem [shape: f32[1,128], index: 8, kind: input, shape index: {}]   ;;  %s1890_s9 = inlined_call_operand.hbm [shape: f32[16,128], index: 9, kind: output, shape index: {}]  }
   0x1   :  { %v36_v0 = vld [vmem:[%s1883_s2 + $0x8] sm:$0xff]  ;;  %v38_v1 = vld [vmem:[%s1883_s2 + $0x18] sm:$0xff]  ;;  %v35_v2 = vld [vmem:[%s1883_s2] sm:$0xff]  ;;  %142 = vmatprep.mubr.f32.mxu0 %v1554_v7 }
   0x2   :  { %v1441_v3 = vpack.c.bf16 %v38_v1, %v36_v0  ;;  %v37_v4 = vld [vmem:[%s1883_s2 + $0x10] sm:$0xff]  ;;  %v40_v5 = vld [vmem:[%s1883_s2 + $0x28] sm:$0xff]  ;;  %v42_v6 = vld [vmem:[%s1883_s2 + $0x38] sm:$0xff] }
   0x3   :  { %v1443_v8 = vpack.c.bf16 %v37_v4, %v35_v2  ;;  %v1445_v9 = vpack.c.bf16 %v42_v6, %v40_v5  ;;  %v39_v10 = vld [vmem:[%s1883_s2 + $0x20] sm:$0xff]  ;;  %v41_v11 = vld [vmem:[%s1883_s2 + $0x30] sm:$0xff]  ;;  %v44_v12 = vld [vmem:[%s1883_s2 + $0x48] sm:$0xff] }
   0x4   :  { %1442 = vmatprep.subr.bf16.mxu0 %v1441_v3  ;;  %v46_v13 = vld [vmem:[%s1883_s2 + $0x58] sm:$0xff]  ;;  %v1447_v14 = vpack.c.bf16 %v41_v11, %v39_v10  ;;  %v43_v16 = vld [vmem:[%s1883_s2 + $0x40] sm:$0xff]  ;;  %v45_v17 = vld [vmem:[%s1883_s2 + $0x50] sm:$0xff] }
   0x5   :  { %1444 = vmatpush1.bf16.msra.mxu0 %v1443_v8  ;;  %v1449_v15 = vpack.c.bf16 %v46_v13, %v44_v12  ;;  %v48_v18 = vld [vmem:[%s1883_s2 + $0x68] sm:$0xff]  ;;  %v50_v19 = vld [vmem:[%s1883_s2 + $0x78] sm:$0xff]  ;;  %v1451_v20 = vpack.c.bf16 %v45_v17, %v43_v16  ;;  %v157_v21 = vld [vmem:[%s1886_s5] sm:$0xff] }
   0x6   :  { %1446 = vmatprep.subr.bf16.mxu0 %v1445_v9  ;;  %v1453_v22 = vpack.c.bf16 %v50_v19, %v48_v18  ;;  %v47_v23 = vld [vmem:[%s1883_s2 + $0x60] sm:$0xff]  ;;  %v49_v24 = vld [vmem:[%s1883_s2 + $0x70] sm:$0xff]  ;;  %195 = vrot.lane.b32.xlu0 %v157_v21, %s1555_s22 }
   0x9   :  { %1448 = vmatpush1.bf16.msra.mxu0 %v1447_v14 }
   0xa   :  { %1450 = vmatprep.subr.bf16.mxu0 %v1449_v15 }
   0xb   :  { %14 = vsyncpa [#allocation3], 0  ;;  %v52_v25 = vld [vmem:[%s1883_s2 + $0x88] sm:$0xff]  ;;  %v54_v26 = vld [vmem:[%s1883_s2 + $0x98] sm:$0xff]  ;;  %s1556_s27 = smov 32   ;;  %v1455_v28 = vpack.c.bf16 %v49_v24, %v47_v23  ;;  %s1557_s13 = smov 64   ;;  %v61_v40 = vlaneseq }
   0xc   :  { %167 = vrot.lane.b32.xlu1 %v157_v21, %s1556_s27  ;;  %v155_v27 = vld [vmem:[%s1885_s4] sm:$0xff]  ;;  %v1457_v29 = vpack.c.bf16 %v54_v26, %v52_v25  ;;  %v53_v31 = vld [vmem:[%s1883_s2 + $0x90] sm:$0xff]  ;;  %v56_v32 = vld [vmem:[%s1883_s2 + $0xa8] sm:$0xff]  ;;  %vm71_vm0 = vcmask 785408   ;;  %vm232_vm1 = vcmask 261120   ;;  %vm332_vm2 = vcmask 64512  }
   0xd   :  { %1452 = vmatpush1.bf16.msra.mxu0 %v1451_v20  ;;  %v51_v30 = vld [vmem:[%s1883_s2 + $0x80] sm:$0xff]  ;;  %187 = vrot.lane.b32.xlu0 %v155_v27, %s1557_s13  ;;  %v58_v33 = vld [vmem:[%s1883_s2 + $0xb8] sm:$0xff]  ;;  %v57_v37 = vld [vmem:[%s1883_s2 + $0xb0] sm:$0xff]  ;;  %v62_v41 = vshrl.u32 %v61_v40, 7  ;;  %vm1558_vm3 = vmmov 0  }
   0xe   :  { %1454 = vmatprep.subr.bf16.mxu0 %v1453_v22  ;;  %v1459_v34 = vpack.c.bf16 %v53_v31, %v51_v30  ;;  %v1461_v35 = vpack.c.bf16 %v58_v33, %v56_v32  ;;  %v55_v36 = vld [vmem:[%s1883_s2 + $0xa0] sm:$0xff]  ;;  %v1726_v1 = vld [vmem:[%s1887_s6 + $0x8] sm:$0xff]  ;;  %v1734_v3 = vld [vmem:[%s1887_s6 + $0x10] sm:$0xff] }
   0xf   :  { %v1463_v38 = vpack.c.bf16 %v57_v37, %v55_v36  ;;  %v33_v39 = vld [vmem:[%s1881_s0] sm:$0xff]  ;;  %v63_v42 = vsub.s32 0, %v62_v41  ;;  %v67_v61 = vsub.s32 1, %v62_v41  ;;  %v1744_v6 = vld [vmem:[%s1887_s6 + $0x18] sm:$0xff]  ;;  %v34_v9 = vld [vmem:[%s1881_s0 + $0x8] sm:$0xff] }
  0x10   :  { %v59_v43 = vld [vmem:[%s1884_s3] sm:$0x3] }
  0x11   :  { %1456 = vmatpush1.bf16.msra.mxu0 %v1455_v28  ;;  %v1704_v44 = vrot.slane %v59_v43, %v63_v42  ;;  %v1712_v59 = vld [vmem:[%s1887_s6] sm:$0xff]  ;;  %v1717_v62 = vrot.slane %v59_v43, %v67_v61  ;;  %v158_v43 = vld [vmem:[%s1886_s5 + $0x8] sm:$0xff] }
  0x12   :  { %1458 = vmatprep.subr.bf16.mxu0 %v1457_v29  ;;  %v1303_v10 = vld [vmem:[%s1882_s1] ss:$0 sm:$0xff] }
  0x15   :  { %1460 = vmatpush1.bf16.msra.mxu0 %v1459_v34 }
  0x16   :  { %1462 = vmatprep.subr.bf16.mxu0 %v1461_v35 }
  0x19   :  { %1464 = vmatpush1.bf16.msra.mxu0 %v1463_v38 }
  0x1a   :  { %1410 = vmatprep.subr.mxu0 %v1554_v7 }
  0x1c   :  { %1301 = vmatmul.mubr.msk.f32.vlgmr.msra.gmra.mrb[0].mxu0 %vm71_vm0, %v33_v39 }
  0x1d   :  { %148 = vmatprep.mubr.f32.mxu0 %v1554_v7 }
  0x20   :  { %1302 = vmatmul.mubr.msk.f32.gmra.mrb[2].mxu0 %vm71_vm0, %v34_v9  ;;  %v1559_v9 = vmov 0.0|0.0  }
  0x21   :  { %1412 = vmatprep.mubr.msk.f32.mxu0 %vm1558_vm3, %v1554_v7 }
  0x78   :  { %v196_v49 = vpop.permute.xlu0 %195 }
  0x7e   :  { %v168_v46 = vpop.permute.xlu1 %167 }
  0x7f   :  { %v188_v52 = vpop.permute.xlu0 %187 }
  0xef   :  { %v144_v45 = vpop.f32.mrb[0].mxu0 }
  0xf0   :  { %v145_v47 = vadd.f32 %v144_v45, %v1704_v44  ;;  %v146_v48 = vpop.f32.mrb[1].mxu0 }
  0xf1   :  { %v1720_v63 = vadd.f32 %v146_v48, %v1717_v62  ;;  %v156_v48 = vld [vmem:[%s1885_s4 + $0x8] sm:$0xff] }
  0xf2   :  { %v173_v50 = vmul.f32 %v168_v46, %v145_v47  ;;  %v201_v51 = vmul.f32 %v196_v49, %v145_v47  ;;  %v193_v53 = vmul.f32 %v188_v52, %v145_v47  ;;  %v163_v54 = vmul.f32 %v155_v27, %v145_v47 }
  0xf3   :  { %v378_v5 = vmul.f32 %v1726_v1, %v1720_v63  ;;  %v150_v45 = vpop.f32.mrb[2].mxu0 }
  0xf4   :  { %205 = vrot.lane.b32.xlu1 %v201_v51, %s1555_s22  ;;  %177 = vrot.lane.b32.xlu0 %v173_v50, %s1555_s22  ;;  %v152_v46 = vpop.f32.mrb[3].mxu0 }
  0xf5   :  { %v1772_v47 = vadd.f32 %v152_v46, %v1717_v62 }
  0xf7   :  { %v914_v49 = vmul.f32 %v1726_v1, %v1772_v47 }
  0xf9   :  { %1411 = vmatpush3.msra.mxu0 %v914_v49 }
  0xfa   :  { %1415 = vmatprep.subr.mxu0 %v1554_v7 }
 0x166   :  { %v206_v55 = vpop.permute.xlu1 %205  ;;  %v178_v56 = vpop.permute.xlu0 %177 }
 0x167   :  { %v211_v57 = vadd.f32 %v206_v55, %v193_v53  ;;  %v183_v58 = vadd.f32 %v178_v56, %v163_v54  ;;  %v151_v53 = vadd.f32 %v150_v45, %v1704_v44 }
 0x169   :  { %230 = vrot.lane.b32.xlu1 %v211_v57, %s1557_s13  ;;  %v218_v60 = vmul.f32 %v183_v58, %v1712_v59  ;;  %v219_v2 = vmul.f32 %v183_v58, %v1726_v1  ;;  %v220_v4 = vmul.f32 %v183_v58, %v1734_v3  ;;  %v221_v8 = vmul.f32 %v183_v58, %v1744_v6 }
 0x16b   :  { %1365 = vmatprep.mubr.msk.f32.mxu1 %vm232_vm1, %v218_v60  ;;  %v377_v60 = vmul.f32 %v1712_v59, %v1720_v63 }
 0x1db   :  { %v231_v0 = vpop.permute.xlu1 %230 }
 0x1dc   :  { %1363 = vmatprep.subr.msk.mxu1 %vm232_vm1, %v231_v0 }
 0x1dd   :  { %1364 = vmatpush3.xpose.msk.msra.mxu1 %vm232_vm1, %v231_v0 }
 0x1de   :  { %1371 = vmatprep.subr.mxu1 %v1554_v7 }
 0x1e0   :  { %1366 = vmatmul.mubr.msk.f32.vlgmr.msra.gmra.mrb[0].mxu1 %vm232_vm1, %v219_v2  ;;  %v379_v2 = vmul.f32 %v1734_v3, %v1720_v63 }
 0x1e1   :  { %1368 = vmatprep.mubr.msk.f32.mxu1 %vm232_vm1, %v220_v4  ;;  %1372 = vmatpush3.msra.mxu1 %v378_v5 }
 0x1e2   :  { %1376 = vmatprep.subr.mxu1 %v1554_v7 }
 0x1e4   :  { %1369 = vmatmul.mubr.msk.f32.gmra.mrb[2].mxu1 %vm232_vm1, %v221_v8  ;;  %v380_v8 = vmul.f32 %v1744_v6, %v1720_v63  ;;  %v215_v63 = vld [vmem:[%s1888_s7 + $0x10] sm:$0xff] }
 0x1e5   :  { %1373 = vmatprep.mubr.msk.f32.mxu1 %vm1558_vm3, %v1554_v7 }
 0x2b3   :  { %v1367_v11 = vpop.f32.mrb[0].mxu1 }
 0x2b4   :  { %v319_v12 = vadd.f32 %v1367_v11, %v1303_v10  ;;  %v313_v13 = vpop.f32.mrb[1].mxu1  ;;  %v214_v11 = vld [vmem:[%s1888_s7 + $0x8] sm:$0xff] }
 0x2b5   :  { %v314_v14 = vadd.f32 %v1303_v10, %v313_v13 }
 0x2b6   :  { %v336_v15 = vsel %vm332_vm2, %v319_v12, -inf }
 0x2b7   :  { %337 = vmax.xlane.f32.xlu0 %v336_v15  ;;  %v1370_v16 = vpop.f32.mrb[2].mxu1  ;;  %v333_v17 = vsel %vm332_vm2, %v314_v14, -inf  ;;  %v216_v15 = vld [vmem:[%s1888_s7 + $0x18] sm:$0xff] }
 0x2b8   :  { %v323_v18 = vpop.f32.mrb[3].mxu1  ;;  %334 = vmax.xlane.f32.xlu1 %v333_v17  ;;  %v329_v20 = vadd.f32 %v1370_v16, %v1303_v10  ;;  %v1469_v16 = vpack.c.bf16 %v216_v15, %v215_v63  ;;  %v913_v63 = vmul.f32 %v1712_v59, %v1772_v47 }
 0x2b9   :  { %v324_v19 = vadd.f32 %v1303_v10, %v323_v18  ;;  %v213_v10 = vld [vmem:[%s1888_s7] sm:$0xff] }
 0x2ba   :  { %v342_v22 = vsel %vm332_vm2, %v329_v20, -inf  ;;  %v1466_v13 = vpack.c.bf16 %v214_v11, %v213_v10 }
 0x2bb   :  { %v339_v21 = vsel %vm332_vm2, %v324_v19, -inf }
 0x2bc   :  { %340 = vmax.xlane.f32.xlu0 %v339_v21 }
 0x2c0   :  { %343 = vmax.xlane.f32.xlu0 %v342_v22  ;;  %v164_v22 = vmul.f32 %v156_v48, %v151_v53 }
 0x344   :  { %v338_v23 = vpop.xlane.xlu0 %337 }
 0x345   :  { %v346_v24 = vsub.f32 %v319_v12, %v338_v23  ;;  %v335_v25 = vpop.xlane.xlu1 %334 }
 0x346   :  { %v345_v26 = vsub.f32 %v314_v14, %v335_v25 }
 0x347   :  { %v351_v27 = vmul.f32 1.442695, %v346_v24 }
 0x348   :  { %v349_v28 = vmul.f32 1.442695, %v345_v26 }
 0x349   :  { %1498 = vpow2.f32 %v351_v27  ;;  %v341_v29 = vpop.xlane.xlu0 %340 }
 0x34a   :  { %1500 = vpow2.f32 %v349_v28  ;;  %v347_v30 = vsub.f32 %v324_v19, %v341_v29 }
 0x34c   :  { %v353_v31 = vmul.f32 1.442695, %v347_v30 }
 0x34d   :  { %v344_v32 = vpop.xlane.xlu0 %343 }
 0x34e   :  { %1502 = vpow2.f32 %v353_v31  ;;  %v348_v33 = vsub.f32 %v329_v20, %v344_v32 }
 0x350   :  { %v355_v34 = vmul.f32 1.442695, %v348_v33 }
 0x352   :  { %1504 = vpow2.f32 %v355_v34  ;;  %v1316_v34 = vld [vmem:[%s1882_s1 + $0x1] ss:$0 sm:$0xff]  ;;  %s1560_s1 = smov [#allocation2]  }
 0x353   :  { %v1499_v35 = vpop.eup %1498 }
 0x354   :  { %v1501_v36 = vpop.eup %1500  ;;  %v360_v37 = vsel %vm332_vm2, %v1499_v35, 0.0 }
 0x355   :  { %361 = vadd.xlane.f32.xlu1 %v360_v37  ;;  %v357_v38 = vsel %vm332_vm2, %v1501_v36, 0.0 }
 0x356   :  { %358 = vadd.xlane.f32.xlu0 %v357_v38 }
 0x358   :  { %v1503_v39 = vpop.eup %1502 }
 0x359   :  { %v363_v40 = vsel %vm332_vm2, %v1503_v39, 0.0 }
 0x35a   :  { %364 = vadd.xlane.f32.xlu1 %v363_v40 }
 0x35c   :  { %v1505_v41 = vpop.eup %1504 }
 0x35d   :  { %v366_v42 = vsel %vm332_vm2, %v1505_v41, 0.0 }
 0x35e   :  { %367 = vadd.xlane.f32.xlu0 %v366_v42 }
 0x36b   :  { %197 = vrot.lane.b32.xlu1 %v158_v43, %s1555_s22 }
 0x36f   :  { %169 = vrot.lane.b32.xlu1 %v158_v43, %s1556_s27 }
 0x374   :  { %189 = vrot.lane.b32.xlu0 %v156_v48, %s1557_s13 }
 0x3e2   :  { %v362_v50 = vpop.xlane.xlu1 %361 }
 0x3e3   :  { %1506 = vrcp.f32 %v362_v50  ;;  %v359_v51 = vpop.xlane.xlu0 %358 }
 0x3e4   :  { %1508 = vrcp.f32 %v359_v51 }
 0x3e7   :  { %v365_v52 = vpop.xlane.xlu1 %364 }
 0x3e8   :  { %1510 = vrcp.f32 %v365_v52 }
 0x3eb   :  { %v198_v54 = vpop.permute.xlu1 %197  ;;  %v368_v0 = vpop.xlane.xlu0 %367 }
 0x3ec   :  { %v202_v55 = vmul.f32 %v198_v54, %v151_v53  ;;  %1512 = vrcp.f32 %v368_v0 }
 0x3ed   :  { %v1507_v56 = vpop.eup %1506 }
 0x3ee   :  { %v374_v57 = vmul.f32 %v1507_v56, %v1499_v35  ;;  %207 = vrot.lane.b32.xlu1 %v202_v55, %s1555_s22  ;;  %v1509_v44 = vpop.eup %1508 }
 0x3ef   :  { %v170_v58 = vpop.permute.xlu1 %169  ;;  %v373_v62 = vmul.f32 %v1509_v44, %v1501_v36  ;;  %v190_v17 = vpop.permute.xlu0 %189 }
 0x3f0   :  { %v174_v61 = vmul.f32 %v170_v58, %v151_v53  ;;  %1374 = vmatmul.mubr.msk.f32.vlgmr.msra.gmra.mrb[4].mxu1 %vm332_vm2, %v374_v57  ;;  %v194_v18 = vmul.f32 %v190_v17, %v151_v53 }
 0x3f1   :  { %1377 = vmatpush3.msra.mxu1 %v377_v60  ;;  %1378 = vmatprep.mubr.msk.f32.mxu1 %vm1558_vm3, %v1554_v7 }
 0x3f2   :  { %179 = vrot.lane.b32.xlu0 %v174_v61, %s1555_s22  ;;  %1381 = vmatprep.subr.mxu1 %v1554_v7  ;;  %v1511_v4 = vpop.eup %1510 }
 0x3f3   :  { %v375_v5 = vmul.f32 %v1511_v4, %v1503_v39 }
 0x3f6   :  { %v1513_v12 = vpop.eup %1512 }
 0x3f7   :  { %v376_v14 = vmul.f32 %v1513_v12, %v1505_v41 }
 0x3f8   :  { %1379 = vmatmul.mubr.msk.f32.vlgmr.msra.gmra.mrb[4].mxu1 %vm332_vm2, %v373_v62 }
 0x3f9   :  { %1382 = vmatpush3.msra.mxu1 %v379_v2  ;;  %1383 = vmatprep.mubr.msk.f32.mxu1 %vm1558_vm3, %v1554_v7 }
 0x3fa   :  { %1386 = vmatprep.subr.mxu1 %v1554_v7 }
 0x400   :  { %1384 = vmatmul.mubr.msk.f32.vlgmr.msra.gmra.mrb[4].mxu1 %vm332_vm2, %v375_v5 }
 0x401   :  { %1387 = vmatpush3.msra.mxu1 %v380_v8  ;;  %1388 = vmatprep.mubr.msk.f32.mxu1 %vm1558_vm3, %v1554_v7 }
 0x402   :  { %1465 = vmatprep.subr.bf16.mxu1 %v1559_v9 }
 0x408   :  { %1389 = vmatmul.mubr.msk.f32.vlgmr.msra.gmra.mrb[4].mxu1 %vm332_vm2, %v376_v14 }
 0x409   :  { %1467 = vmatpush3.bf16.msra.mxu1 %v1466_v13  ;;  %1399 = vmatprep.mubr.msk.f32.mxu1 %vm1558_vm3, %v1554_v7 }
 0x40a   :  { %1468 = vmatprep.subr.bf16.mxu1 %v1559_v9 }
 0x40d   :  { %1470 = vmatpush3.bf16.msra.mxu1 %v1469_v16 }
 0x460   :  { %v208_v19 = vpop.permute.xlu1 %207 }
 0x461   :  { %v212_v20 = vadd.f32 %v208_v19, %v194_v18  ;;  %v915_v18 = vmul.f32 %v1734_v3, %v1772_v47 }
 0x463   :  { %768 = vrot.lane.b32.xlu1 %v212_v20, %s1557_s13  ;;  %v916_v20 = vmul.f32 %v1744_v6, %v1772_v47 }
 0x464   :  { %v180_v21 = vpop.permute.xlu0 %179 }
 0x465   :  { %v184_v24 = vadd.f32 %v180_v21, %v164_v22 }
 0x467   :  { %v755_v26 = vmul.f32 %v184_v24, %v1712_v59  ;;  %v756_v28 = vmul.f32 %v184_v24, %v1726_v1  ;;  %v757_v29 = vmul.f32 %v184_v24, %v1734_v3  ;;  %v758_v30 = vmul.f32 %v184_v24, %v1744_v6  ;;  %v1835_v1 = vld [vmem:[%s1889_s8] ss:$0 sm:$0xff]  ;;  %s1290_s8 = sshll.u32 %s1560_s1, 4  ;;  %s1291_s8 = int_to_ptr.vmem [resolvable:$true] %s1290_s8 }
 0x468   :  { %s1530_s3 = scalar_lea.vmem %s1291_s8, 256  ;;  %p1535_p1 = scmp.lt.s32.totalorder %s1291_s8, %s1291_s8 }
 0x469   :  { %p1531_p0 = scmp.ne.s32.totalorder %s1291_s8, %s1530_s3  ;;  %p1536_p2 = scmp.lt.s32.totalorder %s1530_s3, %s1530_s3 }
 0x46b   :  { %p1537_p3 = por %p1536_p2, %p1535_p1 }
 0x46d   :  { %p1538_p4 = pnand %p1537_p3, %p1531_p0 }
 0x4d5   :  { %v769_v23 = vpop.permute.xlu1 %768 }
 0x4d6   :  { %1402 = vmatprep.subr.msk.mxu1 %vm232_vm1, %v769_v23 }
 0x4db   :  { %v670_v25 = vpop.f32.mrb[4].mxu1 }
 0x4dc   :  { %v1390_v27 = vpop.f32.mrb[5].mxu1  ;;  %1400 = vmatmul.mubr.msk.f32.vlgmr.msra.gmra.mrb[6].mxu1 %vm232_vm1, %v670_v25 }
 0x4dd   :  { %1403 = vmatpush3.xpose.msk.msra.mxu1 %vm232_vm1, %v769_v23  ;;  %1404 = vmatprep.mubr.msk.f32.mxu1 %vm232_vm1, %v755_v26 }
 0x4de   :  { %1471 = vmatprep.subr.bf16.mxu1 %v1559_v9 }
 0x4e0   :  { %1405 = vmatmul.mubr.msk.f32.vlgmr.msra.gmra.mrb[8].mxu1 %vm232_vm1, %v756_v28 }
 0x4e1   :  { %1407 = vmatprep.mubr.msk.f32.mxu1 %vm232_vm1, %v757_v29  ;;  %1473 = vmatpush3.bf16.msra.mxu1 %v1466_v13 }
 0x4e2   :  { %1474 = vmatprep.subr.bf16.mxu1 %v1559_v9 }
 0x4e4   :  { %1408 = vmatmul.mubr.msk.f32.gmra.mrb[10].mxu1 %vm232_vm1, %v758_v30 }
 0x4e5   :  { %1476 = vmatpush3.bf16.msra.mxu1 %v1469_v16  ;;  %1438 = vmatprep.mubr.msk.f32.mxu1 %vm1558_vm3, %v1554_v7 }
 0x5af   :  { %v750_v31 = vpop.f32.mrb[6].mxu1 }
 0x5b0   :  { %v751_v32 = vadd.f32 %v1835_v1, %v750_v31  ;;  %v1401_v33 = vpop.f32.mrb[7].mxu1 }
 0x5b2   :  { %754 = vst [vmem:[#allocation2] sm:$0xff] %v751_v32 }
 0x5b3   :  { %v1406_v35 = vpop.f32.mrb[8].mxu1 }
 0x5b4   :  { %v856_v36 = vadd.f32 %v1406_v35, %v1316_v34  ;;  %v850_v37 = vpop.f32.mrb[9].mxu1 }
 0x5b5   :  { %v851_v38 = vadd.f32 %v1316_v34, %v850_v37 }
 0x5b6   :  { %v872_v39 = vsel %vm332_vm2, %v856_v36, -inf }
 0x5b7   :  { %873 = vmax.xlane.f32.xlu0 %v872_v39  ;;  %v1409_v40 = vpop.f32.mrb[10].mxu1  ;;  %v869_v41 = vsel %vm332_vm2, %v851_v38, -inf }
 0x5b8   :  { %v860_v42 = vpop.f32.mrb[11].mxu1  ;;  %870 = vmax.xlane.f32.xlu1 %v869_v41  ;;  %v866_v45 = vadd.f32 %v1409_v40, %v1316_v34 }
 0x5b9   :  { %v861_v43 = vadd.f32 %v1316_v34, %v860_v42 }
 0x5ba   :  { %v878_v48 = vsel %vm332_vm2, %v866_v45, -inf }
 0x5bb   :  { %v875_v46 = vsel %vm332_vm2, %v861_v43, -inf }
 0x5bc   :  { %876 = vmax.xlane.f32.xlu0 %v875_v46 }
 0x5c0   :  { %879 = vmax.xlane.f32.xlu0 %v878_v48 }
 0x644   :  { %v874_v49 = vpop.xlane.xlu0 %873 }
 0x645   :  { %v882_v50 = vsub.f32 %v856_v36, %v874_v49  ;;  %v871_v51 = vpop.xlane.xlu1 %870 }
 0x646   :  { %v881_v52 = vsub.f32 %v851_v38, %v871_v51 }
 0x647   :  { %v887_v53 = vmul.f32 1.442695, %v882_v50 }
 0x648   :  { %v885_v54 = vmul.f32 1.442695, %v881_v52 }
 0x649   :  { %1514 = vpow2.f32 %v887_v53  ;;  %v877_v55 = vpop.xlane.xlu0 %876 }
 0x64a   :  { %1516 = vpow2.f32 %v885_v54  ;;  %v883_v56 = vsub.f32 %v861_v43, %v877_v55 }
 0x64c   :  { %v889_v57 = vmul.f32 1.442695, %v883_v56 }
 0x64d   :  { %v880_v58 = vpop.xlane.xlu0 %879 }
 0x64e   :  { %1518 = vpow2.f32 %v889_v57  ;;  %v884_v60 = vsub.f32 %v866_v45, %v880_v58 }
 0x650   :  { %v891_v61 = vmul.f32 1.442695, %v884_v60 }
 0x652   :  { %1520 = vpow2.f32 %v891_v61 }
 0x653   :  { %v1515_v44 = vpop.eup %1514 }
 0x654   :  { %v1517_v62 = vpop.eup %1516  ;;  %v896_v0 = vsel %vm332_vm2, %v1515_v44, 0.0 }
 0x655   :  { %897 = vadd.xlane.f32.xlu1 %v896_v0  ;;  %v893_v2 = vsel %vm332_vm2, %v1517_v62, 0.0 }
 0x656   :  { %894 = vadd.xlane.f32.xlu0 %v893_v2 }
 0x658   :  { %v1519_v4 = vpop.eup %1518 }
 0x659   :  { %v899_v5 = vsel %vm332_vm2, %v1519_v4, 0.0 }
 0x65a   :  { %900 = vadd.xlane.f32.xlu1 %v899_v5 }
 0x65c   :  { %v1521_v8 = vpop.eup %1520 }
 0x65d   :  { %v902_v9 = vsel %vm332_vm2, %v1521_v8, 0.0 }
 0x65e   :  { %903 = vadd.xlane.f32.xlu0 %v902_v9 }
 0x6e2   :  { %v898_v10 = vpop.xlane.xlu1 %897 }
 0x6e3   :  { %1522 = vrcp.f32 %v898_v10  ;;  %v895_v11 = vpop.xlane.xlu0 %894 }
 0x6e4   :  { %1524 = vrcp.f32 %v895_v11 }
 0x6e7   :  { %v901_v14 = vpop.xlane.xlu1 %900 }
 0x6e8   :  { %1526 = vrcp.f32 %v901_v14 }
 0x6eb   :  { %v904_v17 = vpop.xlane.xlu0 %903 }
 0x6ec   :  { %1528 = vrcp.f32 %v904_v17 }
 0x6ed   :  { %v1523_v12 = vpop.eup %1522 }
 0x6ee   :  { %v910_v13 = vmul.f32 %v1523_v12, %v1515_v44  ;;  %v1525_v15 = vpop.eup %1524 }
 0x6ef   :  { %v909_v16 = vmul.f32 %v1525_v15, %v1517_v62 }
 0x6f0   :  { %1413 = vmatmul.mubr.msk.f32.vlgmr.msra.gmra.mrb[4].mxu0 %vm332_vm2, %v910_v13 }
 0x6f1   :  { %1416 = vmatpush3.msra.mxu0 %v913_v63  ;;  %1417 = vmatprep.mubr.msk.f32.mxu0 %vm1558_vm3, %v1554_v7 }
 0x6f2   :  { %1420 = vmatprep.subr.mxu0 %v1554_v7  ;;  %v1527_v59 = vpop.eup %1526 }
 0x6f3   :  { %v911_v19 = vmul.f32 %v1527_v59, %v1519_v4 }
 0x6f6   :  { %v1529_v3 = vpop.eup %1528 }
 0x6f7   :  { %v912_v21 = vmul.f32 %v1529_v3, %v1521_v8 }
 0x6f8   :  { %1418 = vmatmul.mubr.msk.f32.vlgmr.msra.gmra.mrb[4].mxu0 %vm332_vm2, %v909_v16 }
 0x6f9   :  { %1421 = vmatpush3.msra.mxu0 %v915_v18  ;;  %1422 = vmatprep.mubr.msk.f32.mxu0 %vm1558_vm3, %v1554_v7 }
 0x6fa   :  { %1425 = vmatprep.subr.mxu0 %v1554_v7 }
 0x700   :  { %1423 = vmatmul.mubr.msk.f32.vlgmr.msra.gmra.mrb[4].mxu0 %vm332_vm2, %v911_v19 }
 0x701   :  { %1426 = vmatpush3.msra.mxu0 %v916_v20  ;;  %1427 = vmatprep.mubr.msk.f32.mxu0 %vm1558_vm3, %v1554_v7 }
 0x708   :  { %1428 = vmatmul.mubr.msk.f32.vlgmr.msra.gmra.mrb[4].mxu0 %vm332_vm2, %v912_v21 }
 0x7db   :  { %v1206_v22 = vpop.f32.mrb[4].mxu0 }
 0x7dc   :  { %v1429_v23 = vpop.f32.mrb[5].mxu0  ;;  %1439 = vmatmul.mubr.msk.f32.vlgmr.msra.gmra.mrb[12].mxu1 %vm232_vm1, %v1206_v22 }
 0x8af   :  { %v1280_v24 = vpop.f32.mrb[12].mxu1 }
 0x8b0   :  { %v1281_v25 = vadd.f32 %v1835_v1, %v1280_v24  ;;  %v1440_v6 = vpop.f32.mrb[13].mxu1 }
 0x8b2   :  { %1284 = vst [vmem:[#allocation2 + $0x8] sm:$0xff] %v1281_v25 }
 0x8b3   :  { %1541 = shalt.err (!%p1538_p4)
}
 0x8b4   :  { %s1542_s29 = scalar_lea.hbm %s1890_s9, 256 }
 0x8b5   :  { %p1543_p5 = scmp.ne.s32.totalorder %s1890_s9, %s1542_s29  ;;  %p1546_p6 = scmp.lt.u32.totalorder %s1542_s29, %s1890_s9 }
 0x8b7   :  { %p1548_p7 = pnand %p1546_p6, %p1543_p5 }
 0x8b9   :  { %1551 = shalt.err (!%p1548_p7)
}
 0x8ba   :  { %s1561_s14 = smov 128   ;;  %s1562_s15 = smov 8  }
 0x8bb   :  { %1296 = dma.vmem_to_hbm [thread:$0]  %s1291_s8, 256, %s1890_s9, [#allocation3], %s1561_s14, %s1561_s14, %s1562_s15  }
 0x8bc   :  { %1552 = dma.done.wait [#allocation3], 256  }
 0x8bd   :  { %1553 = vsyncadd [#allocation3], 4294967040 }
 0x8be   :  { %1300 = vsyncpa [#allocation3], 1 }

</bundles_post_ra>
